<compile_context>
chip_gen: v6e
topology: v6e:2x2x1
jax: 0.10.0
libtpu: 0.0.40
codegen_flags: <defaults>
</compile_context>

<pallas_src>
import functools

import jax
import jax.numpy as jnp
from jax.experimental import pallas as pl
from jax.experimental.pallas import tpu as pltpu


def _projection_kernel(w_ref, b_ref, x_ref, o_ref):
    # w_ref: (C,)                 SMEM f32   Linear weight (row of torch (1, C))
    # b_ref: (1,)                 SMEM f32   bias
    # x_ref: (NB, C, r_tile, 128) VMEM       input tile, native dtype
    # o_ref: (NB, 1, r_tile, 128) VMEM f32   output tile (sublane+lane dense)
    c_dim = x_ref.shape[1]
    x = x_ref[...]
    # Per-channel scalar * vector products, cast in vregs (free on the VPU).
    parts = [x[:, c:c + 1].astype(jnp.float32) * w_ref[c] for c in range(c_dim)]
    # Pairwise tree reduce: avoids a serial add chain if C ever grows.
    while len(parts) > 1:
        nxt = [parts[i] + parts[i + 1] for i in range(0, len(parts) - 1, 2)]
        if len(parts) % 2 == 1:
            nxt.append(parts[-1])
        parts = nxt
    o_ref[...] = parts[0] + b_ref[0]


def projection_forward(x_nchw, weight, bias, *, target_block_elems=256 * 1024):
    """x_nchw: (N, C, H, W); weight: (1, C) or (C,); bias: (1,) -> (N, 1, H, W) f32."""
    N, C, H, W = x_nchw.shape
    HW = H * W

    # Free views only; keep x in its native dtype (cast happens in-kernel).
    x_flat = x_nchw.reshape(N, C, HW)
    HW_pad = pl.cdiv(HW, 128) * 128
    if HW_pad != HW:
        # Pad spatial dim to a multiple of 128 (cheap vs the dense-layout win).
        x_flat = jnp.pad(x_flat, ((0, 0), (0, 0), (0, HW_pad - HW)))
    R = HW_pad // 128
    x_4d = x_flat.reshape(N, C, R, 128)

    w_1d = weight.reshape(C).astype(jnp.float32)
    b_1d = bias.reshape(1).astype(jnp.float32)

    # ---- Tile selection: ~target_block_elems input elements per grid step ----
    per_image_elems = C * R * 128
    if per_image_elems >= target_block_elems:
        # Large images: one image per step, tile the row dim (multiple of 8).
        nb = 1
        r_tile = max(8, (target_block_elems // (C * 128)) // 8 * 8)
        r_tile = min(r_tile, R)
    else:
        # Small images: whole image per step, batch NB images to amortize
        # the per-step overhead.
        r_tile = R
        nb = min(N, max(1, target_block_elems // per_image_elems))

    # Keep at least 2 grid steps when possible (v7x megacore: 2 TCs).
    if pl.cdiv(N, nb) * pl.cdiv(R, r_tile) < 2:
        if N > 1:
            nb = (N + 1) // 2
        elif r_tile == R and R >= 16:
            half = (R // 2) // 8 * 8
            if half >= 8:
                r_tile = half

    grid = (pl.cdiv(N, nb), pl.cdiv(R, r_tile))

    # Explicit VMEM budget (v5e scoped default is only 16 MiB); stay well
    # under v7x's 64 MiB physical per-TC VMEM.
    itemsize = jnp.dtype(x_4d.dtype).itemsize
    in_block_bytes = nb * C * r_tile * 128 * itemsize
    out_block_bytes = nb * 1 * r_tile * 128 * 4
    vmem_bytes = min(64 * 1024 * 1024,
                     max(32 * 1024 * 1024, 4 * (in_block_bytes + out_block_bytes)))

    out_4d = pl.pallas_call(
        _projection_kernel,
        out_shape=jax.ShapeDtypeStruct((N, 1, R, 128), jnp.float32),
        grid=grid,
        in_specs=[
            pl.BlockSpec(memory_space=pltpu.MemorySpace.SMEM),           # weight (C,)
            pl.BlockSpec(memory_space=pltpu.MemorySpace.SMEM),           # bias (1,)
            pl.BlockSpec((nb, C, r_tile, 128), lambda i, j: (i, 0, j, 0)),
        ],
        out_specs=pl.BlockSpec((nb, 1, r_tile, 128), lambda i, j: (i, 0, j, 0)),
        compiler_params=pltpu.CompilerParams(
            dimension_semantics=("parallel", "parallel"),
            vmem_limit_bytes=int(vmem_bytes),
        ),
    )(w_1d, b_1d, x_4d)

    out = out_4d.reshape(N, 1, HW_pad)
    if HW_pad != HW:
        out = out[:, :, :HW]
    return out.reshape(N, 1, H, W)


if __name__ == "__main__":
    key = jax.random.PRNGKey(0)
    kx, kw, kb = jax.random.split(key, 3)

    N, C, H, W = 2, 4, 16, 16
    x = jax.random.normal(kx, (N, C, H, W), dtype=jnp.float32)

    # Deterministic "Linear(C, 1)" parameters (PyTorch-style uniform bound).
    bound = 1.0 / (C ** 0.5)
    weight = jax.random.uniform(kw, (1, C), minval=-bound, maxval=bound,
                                dtype=jnp.float32)
    bias = jax.random.uniform(kb, (1,), minval=-bound, maxval=bound,
                              dtype=jnp.float32)

    out = jax.jit(functools.partial(projection_forward))(x, weight, bias)
    out = jax.block_until_ready(out)

    # Reference check (plain JAX, NHWC linear).
    ref = jnp.einsum("nchw,c->nhw", x, weight[0])[:, None, :, :] + bias[0]
    assert out.shape == (N, 1, H, W), out.shape
    assert jnp.allclose(out, ref, atol=1e-5, rtol=1e-5)

    print("KERNEL_OK")
</pallas_src>

<mosaic_0001>
module attributes {stable_mosaic.version = 11 : i64} {
  func.func @_projection_kernel(%arg0: i32, %arg1: i32, %arg2: memref<4xf32, #tpu.memory_space<smem>>, %arg3: memref<1xf32, #tpu.memory_space<smem>>, %arg4: memref<1x4x2x128xf32, #tpu.memory_space<vmem>>, %arg5: memref<1x1x2x128xf32, #tpu.memory_space<vmem>>) attributes {dimension_semantics = [#tpu.dimension_semantics<parallel>, #tpu.dimension_semantics<parallel>], iteration_bounds = array<i64: 2, 1>, scalar_prefetch = 0 : i64, scratch_operands = 0 : i64, tpu.core_type = #tpu.core_type<tc>, window_params = [{transform_indices = @transform_0, window_bounds = array<i64: 4>}, {transform_indices = @transform_1, window_bounds = array<i64: 1>}, {transform_indices = @transform_2, window_bounds = array<i64: 1, 4, 2, 128>}, {transform_indices = @transform_3, window_bounds = array<i64: 1, 1, 2, 128>}]} {
    %c0 = arith.constant 0 : index
    %c0_0 = arith.constant 0 : index
    %c0_1 = arith.constant 0 : index
    %c0_2 = arith.constant 0 : index
    %0 = vector.load %arg4[%c0, %c0_0, %c0_1, %c0_2] : memref<1x4x2x128xf32, #tpu.memory_space<vmem>>, vector<1x4x2x128xf32>
    %1 = vector.extract_strided_slice %0 {offsets = [0, 0, 0, 0], sizes = [1, 1, 2, 128], strides = [1, 1, 1, 1]} : vector<1x4x2x128xf32> to vector<1x1x2x128xf32>
    %c0_3 = arith.constant 0 : index
    %2 = memref.load %arg2[%c0_3] : memref<4xf32, #tpu.memory_space<smem>>
    %3 = vector.broadcast %2 : f32 to vector<1x1x2x128xf32>
    %4 = arith.mulf %1, %3 : vector<1x1x2x128xf32>
    %5 = vector.extract_strided_slice %0 {offsets = [0, 1, 0, 0], sizes = [1, 1, 2, 128], strides = [1, 1, 1, 1]} : vector<1x4x2x128xf32> to vector<1x1x2x128xf32>
    %c1 = arith.constant 1 : index
    %6 = memref.load %arg2[%c1] : memref<4xf32, #tpu.memory_space<smem>>
    %7 = vector.broadcast %6 : f32 to vector<1x1x2x128xf32>
    %8 = arith.mulf %5, %7 : vector<1x1x2x128xf32>
    %9 = vector.extract_strided_slice %0 {offsets = [0, 2, 0, 0], sizes = [1, 1, 2, 128], strides = [1, 1, 1, 1]} : vector<1x4x2x128xf32> to vector<1x1x2x128xf32>
    %c2 = arith.constant 2 : index
    %10 = memref.load %arg2[%c2] : memref<4xf32, #tpu.memory_space<smem>>
    %11 = vector.broadcast %10 : f32 to vector<1x1x2x128xf32>
    %12 = arith.mulf %9, %11 : vector<1x1x2x128xf32>
    %13 = vector.extract_strided_slice %0 {offsets = [0, 3, 0, 0], sizes = [1, 1, 2, 128], strides = [1, 1, 1, 1]} : vector<1x4x2x128xf32> to vector<1x1x2x128xf32>
    %c3 = arith.constant 3 : index
    %14 = memref.load %arg2[%c3] : memref<4xf32, #tpu.memory_space<smem>>
    %15 = vector.broadcast %14 : f32 to vector<1x1x2x128xf32>
    %16 = arith.mulf %13, %15 : vector<1x1x2x128xf32>
    %17 = arith.addf %4, %8 : vector<1x1x2x128xf32>
    %18 = arith.addf %12, %16 : vector<1x1x2x128xf32>
    %19 = arith.addf %17, %18 : vector<1x1x2x128xf32>
    %c0_4 = arith.constant 0 : index
    %20 = memref.load %arg3[%c0_4] : memref<1xf32, #tpu.memory_space<smem>>
    %21 = vector.broadcast %20 : f32 to vector<1x1x2x128xf32>
    %22 = arith.addf %19, %21 : vector<1x1x2x128xf32>
    %c0_5 = arith.constant 0 : index
    %c0_6 = arith.constant 0 : index
    %c0_7 = arith.constant 0 : index
    %c0_8 = arith.constant 0 : index
    %23 = vector.load %arg5[%c0_5, %c0_6, %c0_7, %c0_8] : memref<1x1x2x128xf32, #tpu.memory_space<vmem>>, vector<1x1x2x128xf32>
    tpu.vector_store %arg5[%c0_5, %c0_6, %c0_7, %c0_8], %22 {strides = array<i32>} : memref<1x1x2x128xf32, #tpu.memory_space<vmem>>, vector<1x1x2x128xf32>,
    return
  }
  func.func @transform_0(%arg0: i32, %arg1: i32) -> i32 {
    %c0_i32 = arith.constant 0 : i32
    %c0_i32_0 = arith.constant 0 : i32
    return %c0_i32 : i32
  }
  func.func @transform_1(%arg0: i32, %arg1: i32) -> i32 {
    %c0_i32 = arith.constant 0 : i32
    %c0_i32_0 = arith.constant 0 : i32
    return %c0_i32 : i32
  }
  func.func @transform_2(%arg0: i32, %arg1: i32) -> (i32, i32, i32, i32) {
    %c0_i32 = arith.constant 0 : i32
    %c0_i32_0 = arith.constant 0 : i32
    %c0_i32_1 = arith.constant 0 : i32
    return %arg0, %c0_i32, %arg1, %c0_i32_0 : i32, i32, i32, i32
  }
  func.func @transform_3(%arg0: i32, %arg1: i32) -> (i32, i32, i32, i32) {
    %c0_i32 = arith.constant 0 : i32
    %c0_i32_0 = arith.constant 0 : i32
    %c0_i32_1 = arith.constant 0 : i32
    return %arg0, %c0_i32, %arg1, %c0_i32_0 : i32, i32, i32, i32
  }
}

</mosaic_0001>

<bundles_post_ra>
// kernel: projection_forward.1
= control target key start
LH: loop header
LB: loop body
LE: loop exit
PB: predicated region body
PF: predicated region fallthrough
CT: control target
= control target key end

     0   :  { %s505_s0 = inlined_call_operand.vmem [shape: f32[4], index: 0, kind: input, shape index: {}]   ;;  %s506_s1 = inlined_call_operand.<no memory space> [shape: f32[1], index: 1, kind: input, shape index: {}]   ;;  %s507_s2 = inlined_call_operand.vmem [shape: f32[2,4,2,128], index: 2, kind: input, shape index: {}]   ;;  %s508_s3 = inlined_call_operand.vmem [shape: f32[2,1,2,128], index: 3, kind: output, shape index: {}]  }
   0x1   :  { %8 = sst [smem:[#allocation2]] %s506_s1 }
   0x2   :  { %9 = vsyncpa [#allocation4], 0  ;;  %s446_s14 = smov 0   ;;  %s448_s15 = smov 0  }
   0x3   :  { %s450_s16 = smov 0  }
   0x4 LB: > { %s328_s1 = sadd.s32 4294967295, %s420_s16   ;;  %s27_s17 = sadd.s32 1, %s416_s15  ;;  %s420_s16 = sphi %s450_s16, %s15_s16   ;;  %s416_s15 = sphi %s448_s15, %s512_s15   ;;  %s412_s14 = sphi %s446_s14, %s511_s14  }
   0x5   : > { %p29_p0 = scmp.ge.s32.totalorder %s27_s17, 2  ;;  %p330_p1 = scmp.ge.s32.totalorder %s420_s16, 1 }
   0x6   : > { %p130_p2 = scmp.lt.s32.totalorder %s420_s16, 3  ;;  %p471_p4 = scmp.eq.s32.totalorder %s328_s1, 0 }
   0x7   : > { %s514_s17 = smov (%p29_p0, %s27_s17), 0  ;;  %s143_s22 = sshll.u32 %s505_s0, 4  ;;  %s144_s22 = int_to_ptr.vmem [resolvable:$true] %s143_s22 }
   0x8   : > { %p467_p3 = pnand %p330_p1, %p130_p2  ;;  %s379_s23 = scalar_lea.vmem %s144_s22, 16 }
   0x9   : > { %p380_p7 = scmp.ne.s32.totalorder %s144_s22, %s379_s23  ;;  %p387_p11 = scmp.lt.s32.totalorder %s144_s22, %s144_s22 }
   0xa   : > { %p348_p5 = pneg %p467_p3  ;;  %p388_p12 = scmp.lt.s32.totalorder %s379_s23, %s379_s23 }
   0xc   : > { %p349_p6 = pnand %p471_p4, %p348_p5  ;;  %p389_p13 = por %p388_p12, %p387_p11 }
   0xe   : > { %p381_p8 = pneg %p349_p6 }
  0x10   : > { %p382_p9 = pnand %p381_p8, %p380_p7 }
  0x12   : > { %p383_p10 = pneg %p382_p9 }
  0x14   : > { %p390_p0 = pnand %p389_p13, %p383_p10 }
  0x16   : > { %393 = shalt.err (!%p390_p0)
}
  0x17   : > { %s422_s24 = smov [#allocation3]   ;;  %170 = sbr.rel (%p467_p3) target bundleno = 50 (0x32), region = 32 }
  0x18   : > { %351 = dma.vmem_to_smem (!%p349_p6), %s144_s22, 16, %s422_s24, [#allocation4]  }
  0x1c   : > { %407 = dma.done.wait (%p471_p4), [#allocation4], 16  }
  0x1d   : > { %409 = vsyncadd (%p471_p4), [#allocation4], 4294967280 }
  0x1e   : > { %176 = sfence }
  0x1f   : > { %p200_p1 = scmp.lt.s32.totalorder %s412_s14, 1  ;;  %s219_s25 = sld [smem:[#allocation3]] }
  0x20   : > { %s338_s26 = sld [smem:[#allocation3 + $0x1]] }
  0x21   : > { %s516_s14 = smov (!%p200_p1, %s412_s14), 1  ;;  %s339_s27 = sld [smem:[#allocation3 + $0x2]] }
  0x22   : > { %s343_s28 = sshll.u32 %s516_s14, 3  ;;  %s340_s5 = sld [smem:[#allocation3 + $0x3]] }
  0x23   : > { %s207_s4 = scalar_lea.vmem %s507_s2, %s343_s28  ;;  %s234_s6 = sld [smem:[#allocation2]] }
  0x24   : > { %v215_v0 = vld [vmem:[%s207_s4] sm:$0x3]  ;;  %v216_v1 = vld [vmem:[%s207_s4 + $0x2] sm:$0x3]  ;;  %v217_v4 = vld [vmem:[%s207_s4 + $0x4] sm:$0x3] }
  0x25   : > { %v220_v2 = vstv %s219_s25  ;;  %v218_v8 = vld [vmem:[%s207_s4 + $0x6] sm:$0x3]  ;;  %s337_s7 = sshll.u32 %s516_s14, 1 }
  0x26   : > { %v223_v3 = vstv %s338_s26  ;;  %v221_v6 = vmul.f32 %v220_v2, %v215_v0  ;;  %s214_s10 = scalar_lea.vmem %s508_s3, %s337_s7 }
  0x27   : > { %v226_v5 = vstv %s339_s27  ;;  %v224_v7 = vmul.f32 %v223_v3, %v216_v1 }
  0x28   : > { %v227_v9 = vmul.f32 %v226_v5, %v217_v4  ;;  %v229_v10 = vstv %s340_s5 }
  0x29   : > { %v230_v11 = vmul.f32 %v229_v10, %v218_v8  ;;  %v231_v12 = vadd.f32 %v224_v7, %v221_v6  ;;  %v235_v14 = vstv %s234_s6 }
  0x2b   : > { %v232_v13 = vadd.f32 %v230_v11, %v227_v9 }
  0x2d   : > { %v233_v15 = vadd.f32 %v232_v13, %v231_v12 }
  0x2f   : > { %v236_v16 = vadd.f32 %v235_v14, %v233_v15 }
  0x31   : > { %237 = vst [vmem:[%s214_s10] sm:$0x3] %v236_v16 }
  0x32 PF: > { %s15_s16 = sadd.s32 1, %s420_s16   ;;  %s511_s14 = smov %s416_s15 }
  0x33   : > { %p12_p2 = scmp.ge.s32.totalorder %s15_s16, 4   ;;  %s512_s15 = smov %s514_s17 }
  0x35   :  { %14 = sbr.rel (!%p12_p2) target bundleno = 4 (0x4), region = 67 }
  0x3a   :  { %263 = vsyncpa [#allocation4], 1 }
  0x3b   :  { %265 = vsyncpa [#allocation4 + $0x1], 1 }

</bundles_post_ra>
